<compile_context>
chip_gen: v7x
topology: tpu7x:2x2x1
jax: 0.10.0
libtpu: 0.0.40
codegen_flags: <defaults>
</compile_context>

<pallas_src>
import functools
import numpy as np
import jax
import jax.numpy as jnp
from jax.experimental import pallas as pl
from jax.experimental.pallas import tpu as pltpu

# ----- hyper-parameters of the module instantiation -----
DIM_IN = 4
DIM_OUT = 8
HEADS = 4
DIM_K = 16
DIM_U = 1                      # intra-depth u (this config uses u == 1)
DIM_V = DIM_OUT // HEADS       # per-head value dim = 2
M = 4                          # global context size => spatial dims = (M, M, M)
BN_EPS = 1e-5

assert DIM_U == 1, "kernel below is specialized for dim_intra == 1"


def _lambda3d_kernel(x_ref, w_ref, e2_ref, o_ref, *, B, N, H, K, V):
    """Whole-problem LambdaLayer3d forward in the positions-on-lanes layout.

    x_ref : (C, B*N)     input, column index = b*N + n
    w_ref : (WP, C)      fused [wq; wk; wv; zero-pad] projection weight (transposed)
    e2_ref: (N, N*K)     rel-pos table, e2T[m, k*N + n] = E[n, m, k]
    o_ref : (H*V, B*N)   output slab, row = h*V + v, column = b*N + n
    """
    HK = H * K

    # ---- fused q|k|v 1x1x1 convolution: ONE MXU matmul, lane-dense output -----
    qkv = jnp.dot(w_ref[...], x_ref[...], preferred_element_type=jnp.float32)
    qT = qkv[0:HK, :]                      # (H*K, B*N)  row = h*K + k
    kT = qkv[HK:HK + K, :]                 # (K,   B*N)
    vT = qkv[HK + K:HK + K + V, :]         # (V,   B*N)

    # ---- BatchNorm3d training-mode batch stats over all B*N positions ---------
    # (gamma=1, beta=0, biased variance; one-pass E[x^2] - mu^2)
    def bn(t):
        mu = jnp.mean(t, axis=1, keepdims=True)
        var = jnp.mean(t * t, axis=1, keepdims=True) - mu * mu
        return (t - mu) * jax.lax.rsqrt(var + BN_EPS)

    qT = bn(qT)                            # (H*K, B*N)
    vT = bn(vT)                            # (V,   B*N)

    # ---- softmax numerator over context positions (lane axis) -----------------
    # A shared per-row shift is softmax-invariant, so one global lane max is
    # enough for stability; per-batch denominators are applied below.
    ke = jnp.exp(kT - jnp.max(kT, axis=1, keepdims=True))        # (K, B*N)

    # ---- lambda_p for ALL batches with ONE lane-dense matmul ------------------
    #   vbm[b*V + v, m]  = v_norm[b, v, m]
    #   e2T[m, k*N + n]  = E[n, m, k]
    #   lam_p[b*V + v, k*N + n] = lambda_p[b, n, k, v]
    vbm = jnp.concatenate([vT[:, b * N:(b + 1) * N] for b in range(B)], axis=0)
    lam_p = jnp.dot(vbm, e2_ref[...], preferred_element_type=jnp.float32)  # (B*V, K*N)
    lam_p = lam_p.reshape(B * V, K, N)     # [b*V + v, k, n]  (n stays on lanes)

    # ---- per-batch tail: softmax denominator, lambda_c, combine ---------------
    # B = 2 static unroll over lane-aligned 64-lane halves.
    y_halves = []
    for b in range(B):
        sl = slice(b * N, (b + 1) * N)
        ke_b = ke[:, sl]                                               # (K, N)
        ksm_b = ke_b / jnp.sum(ke_b, axis=1, keepdims=True)            # (K, N)
        v_b = vT[:, sl]                                                # (V, N)

        # lambda_c[b, k, v]  -> (V, K, 1), broadcasts along n
        lam_c_b = jnp.sum(ksm_b[None, :, :] * v_b[:, None, :],
                          axis=2, keepdims=True)                       # (V, K, 1)

        # combined lambda for this batch: (V, K, N)
        lam_b = lam_p[b * V:(b + 1) * V] + lam_c_b

        # y[b, h, v, n] = sum_k q[b, h, k, n] * lam_b[v, k, n]
        q_b = qT[:, sl].reshape(H, 1, K, N)                            # (H, 1, K, N)
        y_b = jnp.sum(q_b * lam_b[None, :, :, :], axis=2)              # (H, V, N)
        y_halves.append(y_b.reshape(H * V, N))

    # one lane-dense (8, 128) store (single aligned f32 vreg tile)
    o_ref[...] = jnp.concatenate(y_halves, axis=1)


def compute_relative_positions(d, h, w, m):
    """numpy replica of LambdaLayer3d.compute_relative_positions."""
    grids = np.stack(np.meshgrid(np.arange(d), np.arange(h), np.arange(w), indexing="ij"))
    pos = grids.reshape(3, -1).T                     # (n, 3)
    rel = pos[None, :] - pos[:, None]                # (n, n, 3)
    rel = np.clip(rel, -m, m) + (m - 1)
    return rel.astype(np.int32)


def prepare_lambda_params(wq, wk, wv, rel_pos_emb):
    """One-time module-init precompute (hoisted out of the per-call forward):
    transposed fused projection weight, transposed rel-pos table
    e2T[m, k*N + n] = E[n, m, k, 0], and E (kept for the pure-JAX reference)."""
    N = M ** 3
    rel = compute_relative_positions(M, M, M, M)                       # (N, N, 3)
    E = rel_pos_emb[rel[..., 0], rel[..., 1], rel[..., 2]]             # (N, N, K, U)
    e2T = jnp.transpose(E[..., 0], (1, 2, 0)).reshape(N, N * DIM_K)    # (N, N*K)
    wT = jnp.concatenate([wq, wk, wv], axis=1).T                       # (82, C)
    wT = jnp.pad(wT, ((0, (-wT.shape[0]) % 8), (0, 0)))                # (88, C)
    return wT, e2T, E


@jax.jit
def lambda_layer3d(x, wT_fused, e2T):
    """x: (B, C, D, H, W) NCDHW -> (B, DIM_OUT, D, H, W)."""
    B, C, D, Hs, Ws = x.shape
    N = D * Hs * Ws
    BN = B * N
    HV = HEADS * DIM_V
    WP = wT_fused.shape[0]
    NK = e2T.shape[1]

    # layout glue (fused by XLA under this jit): NCDHW -> (C, B*N)
    xT = jnp.transpose(x.reshape(B, C, N), (1, 0, 2)).reshape(C, BN)

    kern = functools.partial(_lambda3d_kernel,
                             B=B, N=N, H=HEADS, K=DIM_K, V=DIM_V)
    yT = pl.pallas_call(
        kern,
        out_shape=jax.ShapeDtypeStruct((HV, BN), jnp.float32),
        grid=(1,),
        in_specs=[
            pl.BlockSpec((C, BN), lambda i: (0, 0)),
            pl.BlockSpec((WP, C), lambda i: (0, 0)),
            pl.BlockSpec((N, NK), lambda i: (0, 0)),
        ],
        out_specs=pl.BlockSpec((HV, BN), lambda i: (0, 0)),
        compiler_params=pltpu.CompilerParams(dimension_semantics=("arbitrary",)),
    )(xT, wT_fused, e2T)

    # (H*V, B*N) -> (B, H*V, D, H, W)
    out = jnp.transpose(yT.reshape(HV, B, N), (1, 0, 2))
    return out.reshape(B, HV, D, Hs, Ws)


def reference_forward(x, wq, wk, wv, E):
    """Pure-JAX transcription of the PyTorch forward (global context branch)."""
    B, C, D, Hs, Ws = x.shape
    N = D * Hs * Ws
    xf = x.reshape(B, C, N)
    q = jnp.einsum("co,bcn->bon", wq, xf)
    k = jnp.einsum("co,bcn->bon", wk, xf)
    v = jnp.einsum("co,bcn->bon", wv, xf)

    def bn(t):
        mu = jnp.mean(t, axis=(0, 2), keepdims=True)
        var = jnp.mean((t - mu) ** 2, axis=(0, 2), keepdims=True)
        return (t - mu) / jnp.sqrt(var + BN_EPS)

    q = bn(q)
    v = bn(v)
    q = q.reshape(B, HEADS, DIM_K, N)
    k = k.reshape(B, DIM_U, DIM_K, N)
    v = v.reshape(B, DIM_U, DIM_V, N)
    k = jax.nn.softmax(k, axis=-1)
    lambda_c = jnp.einsum("bukm,buvm->bkv", k, v)
    y_c = jnp.einsum("bhkn,bkv->bhvn", q, lambda_c)
    lambda_p = jnp.einsum("nmku,buvm->bnkv", E, v)
    y_p = jnp.einsum("bhkn,bnkv->bhvn", q, lambda_p)
    Y = y_c + y_p
    return Y.reshape(B, HEADS * DIM_V, D, Hs, Ws)


if __name__ == "__main__":
    key = jax.random.PRNGKey(0)
    kx, kq, kk_, kv, ke_ = jax.random.split(key, 5)

    B, D, Hs, Ws = 2, M, M, M
    x = jax.random.normal(kx, (B, DIM_IN, D, Hs, Ws), dtype=jnp.float32)

    # deterministic parameter init mirroring the module's __init__
    wq = jax.random.normal(kq, (DIM_IN, DIM_K * HEADS), jnp.float32) * (DIM_K * DIM_OUT) ** -0.5
    wk = jax.random.normal(kk_, (DIM_IN, DIM_K * DIM_U), jnp.float32) * DIM_OUT ** -0.5
    wv = jax.random.normal(kv, (DIM_IN, DIM_V * DIM_U), jnp.float32) * DIM_OUT ** -0.5
    rel_len = 2 * M - 1
    rel_pos_emb = jax.random.uniform(ke_, (rel_len, rel_len, rel_len, DIM_K, DIM_U),
                                     dtype=jnp.float32)

    # one-time "module init" precompute (hoisted out of the forward pass)
    wT_fused, e2T, E = prepare_lambda_params(wq, wk, wv, rel_pos_emb)
    wT_fused, e2T = jax.block_until_ready((wT_fused, e2T))

    out = lambda_layer3d(x, wT_fused, e2T)
    out = jax.block_until_ready(out)

    ref = reference_forward(x, wq, wk, wv, E)
    assert out.shape == (B, DIM_OUT, D, Hs, Ws)
    np.testing.assert_allclose(np.asarray(out), np.asarray(ref), rtol=1e-3, atol=1e-3)
    print("KERNEL_OK")
</pallas_src>

<mosaic_0001>
module attributes {stable_mosaic.version = 11 : i64} {
  func.func @_lambda3d_kernel(%arg0: i32, %arg1: memref<4x128xf32, #tpu.memory_space<vmem>>, %arg2: memref<88x4xf32, #tpu.memory_space<vmem>>, %arg3: memref<64x1024xf32, #tpu.memory_space<vmem>>, %arg4: memref<8x128xf32, #tpu.memory_space<vmem>>) attributes {dimension_semantics = [#tpu.dimension_semantics<arbitrary>], iteration_bounds = array<i64: 1>, scalar_prefetch = 0 : i64, scratch_operands = 0 : i64, tpu.core_type = #tpu.core_type<tc>, window_params = [{pipeline_mode = #tpu.pipeline_mode<synchronous>, transform_indices = @transform_0, window_bounds = array<i64: 4, 128>}, {pipeline_mode = #tpu.pipeline_mode<synchronous>, transform_indices = @transform_1, window_bounds = array<i64: 88, 4>}, {pipeline_mode = #tpu.pipeline_mode<synchronous>, transform_indices = @transform_2, window_bounds = array<i64: 64, 1024>}, {pipeline_mode = #tpu.pipeline_mode<synchronous>, transform_indices = @transform_3, window_bounds = array<i64: 8, 128>}]} {
    %c0 = arith.constant 0 : index
    %c0_0 = arith.constant 0 : index
    %0 = vector.load %arg2[%c0, %c0_0] : memref<88x4xf32, #tpu.memory_space<vmem>>, vector<88x4xf32>
    %c0_1 = arith.constant 0 : index
    %c0_2 = arith.constant 0 : index
    %1 = vector.load %arg1[%c0_1, %c0_2] : memref<4x128xf32, #tpu.memory_space<vmem>>, vector<4x128xf32>
    %cst = arith.constant dense<0.000000e+00> : vector<88x128xf32>
    %2 = tpu.matmul %0, %1, %cst {dimension_numbers = #tpu.dot_dimension_numbers<[1], [0], [0], [1], [0, 0, 1, 1], [], []>} : vector<88x4xf32>, vector<4x128xf32>, vector<88x128xf32> -> vector<88x128xf32>
    %3 = vector.extract_strided_slice %2 {offsets = [0, 0], sizes = [64, 128], strides = [1, 1]} : vector<88x128xf32> to vector<64x128xf32>
    %4 = vector.extract_strided_slice %2 {offsets = [64, 0], sizes = [16, 128], strides = [1, 1]} : vector<88x128xf32> to vector<16x128xf32>
    %5 = vector.extract_strided_slice %2 {offsets = [80, 0], sizes = [2, 128], strides = [1, 1]} : vector<88x128xf32> to vector<2x128xf32>
    %cst_3 = arith.constant dense<0.000000e+00> : vector<64xf32>
    %6 = vector.multi_reduction <add>, %3, %cst_3 [1] : vector<64x128xf32> to vector<64xf32>
    %7 = vector.shape_cast %6 : vector<64xf32> to vector<64x1xf32>
    %cst_4 = arith.constant 1.280000e+02 : f32
    %8 = vector.broadcast %cst_4 : f32 to vector<64x1xf32>
    %9 = arith.divf %7, %8 : vector<64x1xf32>
    %10 = arith.mulf %3, %3 : vector<64x128xf32>
    %cst_5 = arith.constant dense<0.000000e+00> : vector<64xf32>
    %11 = vector.multi_reduction <add>, %10, %cst_5 [1] : vector<64x128xf32> to vector<64xf32>
    %12 = vector.shape_cast %11 : vector<64xf32> to vector<64x1xf32>
    %cst_6 = arith.constant 1.280000e+02 : f32
    %13 = vector.broadcast %cst_6 : f32 to vector<64x1xf32>
    %14 = arith.divf %12, %13 : vector<64x1xf32>
    %15 = arith.mulf %9, %9 : vector<64x1xf32>
    %16 = arith.subf %14, %15 : vector<64x1xf32>
    %17 = vector.broadcast %9 : vector<64x1xf32> to vector<64x128xf32>
    %18 = arith.subf %3, %17 : vector<64x128xf32>
    %cst_7 = arith.constant 9.99999974E-6 : f32
    %19 = vector.broadcast %cst_7 : f32 to vector<64x1xf32>
    %20 = arith.addf %16, %19 : vector<64x1xf32>
    %21 = math.rsqrt %20 : vector<64x1xf32>
    %22 = vector.broadcast %21 : vector<64x1xf32> to vector<64x128xf32>
    %23 = arith.mulf %18, %22 : vector<64x128xf32>
    %cst_8 = arith.constant dense<0.000000e+00> : vector<2xf32>
    %24 = vector.multi_reduction <add>, %5, %cst_8 [1] : vector<2x128xf32> to vector<2xf32>
    %25 = vector.shape_cast %24 : vector<2xf32> to vector<2x1xf32>
    %cst_9 = arith.constant 1.280000e+02 : f32
    %26 = vector.broadcast %cst_9 : f32 to vector<2x1xf32>
    %27 = arith.divf %25, %26 : vector<2x1xf32>
    %28 = arith.mulf %5, %5 : vector<2x128xf32>
    %cst_10 = arith.constant dense<0.000000e+00> : vector<2xf32>
    %29 = vector.multi_reduction <add>, %28, %cst_10 [1] : vector<2x128xf32> to vector<2xf32>
    %30 = vector.shape_cast %29 : vector<2xf32> to vector<2x1xf32>
    %cst_11 = arith.constant 1.280000e+02 : f32
    %31 = vector.broadcast %cst_11 : f32 to vector<2x1xf32>
    %32 = arith.divf %30, %31 : vector<2x1xf32>
    %33 = arith.mulf %27, %27 : vector<2x1xf32>
    %34 = arith.subf %32, %33 : vector<2x1xf32>
    %35 = vector.broadcast %27 : vector<2x1xf32> to vector<2x128xf32>
    %36 = arith.subf %5, %35 : vector<2x128xf32>
    %cst_12 = arith.constant 9.99999974E-6 : f32
    %37 = vector.broadcast %cst_12 : f32 to vector<2x1xf32>
    %38 = arith.addf %34, %37 : vector<2x1xf32>
    %39 = math.rsqrt %38 : vector<2x1xf32>
    %40 = vector.broadcast %39 : vector<2x1xf32> to vector<2x128xf32>
    %41 = arith.mulf %36, %40 : vector<2x128xf32>
    %cst_13 = arith.constant dense<0xFF800000> : vector<16xf32>
    %42 = vector.multi_reduction <maximumf>, %4, %cst_13 [1] : vector<16x128xf32> to vector<16xf32>
    %43 = vector.shape_cast %42 : vector<16xf32> to vector<16x1xf32>
    %44 = vector.broadcast %43 : vector<16x1xf32> to vector<16x128xf32>
    %45 = arith.subf %4, %44 : vector<16x128xf32>
    %46 = math.exp %45 : vector<16x128xf32>
    %47 = vector.extract_strided_slice %41 {offsets = [0, 0], sizes = [2, 64], strides = [1, 1]} : vector<2x128xf32> to vector<2x64xf32>
    %48 = vector.extract_strided_slice %41 {offsets = [0, 64], sizes = [2, 64], strides = [1, 1]} : vector<2x128xf32> to vector<2x64xf32>
    %49 = tpu.concatenate %47, %48 in 0 : vector<2x64xf32>, vector<2x64xf32> -> vector<4x64xf32>
    %c0_14 = arith.constant 0 : index
    %c0_15 = arith.constant 0 : index
    %50 = vector.load %arg3[%c0_14, %c0_15] : memref<64x1024xf32, #tpu.memory_space<vmem>>, vector<64x1024xf32>
    %cst_16 = arith.constant dense<0.000000e+00> : vector<4x1024xf32>
    %51 = tpu.matmul %49, %50, %cst_16 {dimension_numbers = #tpu.dot_dimension_numbers<[1], [0], [0], [1], [0, 0, 1, 1], [], []>} : vector<4x64xf32>, vector<64x1024xf32>, vector<4x1024xf32> -> vector<4x1024xf32>
    %52 = vector.shape_cast %51 : vector<4x1024xf32> to vector<4x16x64xf32>
    %53 = vector.extract_strided_slice %46 {offsets = [0, 0], sizes = [16, 64], strides = [1, 1]} : vector<16x128xf32> to vector<16x64xf32>
    %cst_17 = arith.constant dense<0.000000e+00> : vector<16xf32>
    %54 = vector.multi_reduction <add>, %53, %cst_17 [1] : vector<16x64xf32> to vector<16xf32>
    %55 = vector.shape_cast %54 : vector<16xf32> to vector<16x1xf32>
    %56 = vector.broadcast %55 : vector<16x1xf32> to vector<16x64xf32>
    %57 = arith.divf %53, %56 : vector<16x64xf32>
    %58 = vector.extract_strided_slice %41 {offsets = [0, 0], sizes = [2, 64], strides = [1, 1]} : vector<2x128xf32> to vector<2x64xf32>
    %59 = vector.shape_cast %57 : vector<16x64xf32> to vector<1x16x64xf32>
    %60 = vector.shape_cast %58 : vector<2x64xf32> to vector<2x1x64xf32>
    %61 = vector.broadcast %59 : vector<1x16x64xf32> to vector<2x16x64xf32>
    %62 = vector.broadcast %60 : vector<2x1x64xf32> to vector<2x16x64xf32>
    %63 = arith.mulf %61, %62 : vector<2x16x64xf32>
    %cst_18 = arith.constant dense<0.000000e+00> : vector<2x16xf32>
    %64 = vector.multi_reduction <add>, %63, %cst_18 [2] : vector<2x16x64xf32> to vector<2x16xf32>
    %65 = vector.shape_cast %64 : vector<2x16xf32> to vector<2x16x1xf32>
    %66 = vector.extract_strided_slice %52 {offsets = [0, 0, 0], sizes = [2, 16, 64], strides = [1, 1, 1]} : vector<4x16x64xf32> to vector<2x16x64xf32>
    %67 = vector.broadcast %65 : vector<2x16x1xf32> to vector<2x16x64xf32>
    %68 = arith.addf %66, %67 : vector<2x16x64xf32>
    %69 = vector.extract_strided_slice %23 {offsets = [0, 0], sizes = [64, 64], strides = [1, 1]} : vector<64x128xf32> to vector<64x64xf32>
    %70 = vector.shape_cast %69 : vector<64x64xf32> to vector<4x1x16x64xf32>
    %71 = vector.shape_cast %68 : vector<2x16x64xf32> to vector<1x2x16x64xf32>
    %72 = vector.broadcast %70 : vector<4x1x16x64xf32> to vector<4x2x16x64xf32>
    %73 = vector.broadcast %71 : vector<1x2x16x64xf32> to vector<4x2x16x64xf32>
    %74 = arith.mulf %72, %73 : vector<4x2x16x64xf32>
    %cst_19 = arith.constant dense<0.000000e+00> : vector<4x2x64xf32>
    %75 = vector.multi_reduction <add>, %74, %cst_19 [2] : vector<4x2x16x64xf32> to vector<4x2x64xf32>
    %76 = vector.shape_cast %75 : vector<4x2x64xf32> to vector<8x64xf32>
    %77 = vector.extract_strided_slice %46 {offsets = [0, 64], sizes = [16, 64], strides = [1, 1]} : vector<16x128xf32> to vector<16x64xf32>
    %cst_20 = arith.constant dense<0.000000e+00> : vector<16xf32>
    %78 = vector.multi_reduction <add>, %77, %cst_20 [1] : vector<16x64xf32> to vector<16xf32>
    %79 = vector.shape_cast %78 : vector<16xf32> to vector<16x1xf32>
    %80 = vector.broadcast %79 : vector<16x1xf32> to vector<16x64xf32>
    %81 = arith.divf %77, %80 : vector<16x64xf32>
    %82 = vector.extract_strided_slice %41 {offsets = [0, 64], sizes = [2, 64], strides = [1, 1]} : vector<2x128xf32> to vector<2x64xf32>
    %83 = vector.shape_cast %81 : vector<16x64xf32> to vector<1x16x64xf32>
    %84 = vector.shape_cast %82 : vector<2x64xf32> to vector<2x1x64xf32>
    %85 = vector.broadcast %83 : vector<1x16x64xf32> to vector<2x16x64xf32>
    %86 = vector.broadcast %84 : vector<2x1x64xf32> to vector<2x16x64xf32>
    %87 = arith.mulf %85, %86 : vector<2x16x64xf32>
    %cst_21 = arith.constant dense<0.000000e+00> : vector<2x16xf32>
    %88 = vector.multi_reduction <add>, %87, %cst_21 [2] : vector<2x16x64xf32> to vector<2x16xf32>
    %89 = vector.shape_cast %88 : vector<2x16xf32> to vector<2x16x1xf32>
    %90 = vector.extract_strided_slice %52 {offsets = [2, 0, 0], sizes = [2, 16, 64], strides = [1, 1, 1]} : vector<4x16x64xf32> to vector<2x16x64xf32>
    %91 = vector.broadcast %89 : vector<2x16x1xf32> to vector<2x16x64xf32>
    %92 = arith.addf %90, %91 : vector<2x16x64xf32>
    %93 = vector.extract_strided_slice %23 {offsets = [0, 64], sizes = [64, 64], strides = [1, 1]} : vector<64x128xf32> to vector<64x64xf32>
    %94 = vector.shape_cast %93 : vector<64x64xf32> to vector<4x1x16x64xf32>
    %95 = vector.shape_cast %92 : vector<2x16x64xf32> to vector<1x2x16x64xf32>
    %96 = vector.broadcast %94 : vector<4x1x16x64xf32> to vector<4x2x16x64xf32>
    %97 = vector.broadcast %95 : vector<1x2x16x64xf32> to vector<4x2x16x64xf32>
    %98 = arith.mulf %96, %97 : vector<4x2x16x64xf32>
    %cst_22 = arith.constant dense<0.000000e+00> : vector<4x2x64xf32>
    %99 = vector.multi_reduction <add>, %98, %cst_22 [2] : vector<4x2x16x64xf32> to vector<4x2x64xf32>
    %100 = vector.shape_cast %99 : vector<4x2x64xf32> to vector<8x64xf32>
    %101 = tpu.concatenate %76, %100 in 1 : vector<8x64xf32>, vector<8x64xf32> -> vector<8x128xf32>
    %c0_23 = arith.constant 0 : index
    %c0_24 = arith.constant 0 : index
    %102 = vector.load %arg4[%c0_23, %c0_24] : memref<8x128xf32, #tpu.memory_space<vmem>>, vector<8x128xf32>
    tpu.vector_store %arg4[%c0_23, %c0_24], %101 {strides = array<i32>} : memref<8x128xf32, #tpu.memory_space<vmem>>, vector<8x128xf32>,
    return
  }
  func.func @transform_0(%arg0: i32) -> (i32, i32) {
    %c0_i32 = arith.constant 0 : i32
    %c0_i32_0 = arith.constant 0 : i32
    %c0_i32_1 = arith.constant 0 : i32
    return %c0_i32, %c0_i32_0 : i32, i32
  }
  func.func @transform_1(%arg0: i32) -> (i32, i32) {
    %c0_i32 = arith.constant 0 : i32
    %c0_i32_0 = arith.constant 0 : i32
    %c0_i32_1 = arith.constant 0 : i32
    return %c0_i32, %c0_i32_0 : i32, i32
  }
  func.func @transform_2(%arg0: i32) -> (i32, i32) {
    %c0_i32 = arith.constant 0 : i32
    %c0_i32_0 = arith.constant 0 : i32
    %c0_i32_1 = arith.constant 0 : i32
    return %c0_i32, %c0_i32_0 : i32, i32
  }
  func.func @transform_3(%arg0: i32) -> (i32, i32) {
    %c0_i32 = arith.constant 0 : i32
    %c0_i32_0 = arith.constant 0 : i32
    %c0_i32_1 = arith.constant 0 : i32
    return %c0_i32, %c0_i32_0 : i32, i32
  }
}

</mosaic_0001>

<bundles_post_ra>
// kernel: lambda_layer3d.1
= control target key start
LH: loop header
LB: loop body
LE: loop exit
PB: predicated region body
PF: predicated region fallthrough
CT: control target
= control target key end

     0   :  { %8 = vsyncpa [#allocation3], 0  ;;  %s1399_s12 = smov [#allocation2]   ;;  %s1847_s0 = inlined_call_operand.vmem [shape: f32[4,128], index: 0, kind: input, shape index: {}]   ;;  %s1848_s1 = inlined_call_operand.vmem [shape: f32[88,4], index: 1, kind: input, shape index: {}]   ;;  %s1849_s2 = inlined_call_operand.hbm [shape: f32[64,1024], index: 2, kind: input, shape index: {}]   ;;  %s1850_s3 = inlined_call_operand.vmem [shape: f32[8,128], index: 3, kind: output, shape index: {}]  }
   0x1   :  { %s18_s13 = sshll.u32 %s1399_s12, 4  ;;  %s1375_s16 = scalar_lea.hbm %s1849_s2, 8192  ;;  %s19_s13 = int_to_ptr.vmem [resolvable:$true] %s18_s13 }
   0x2   :  { %p1376_p0 = scmp.ne.s32.totalorder %s1849_s2, %s1375_s16  ;;  %p1379_p1 = scmp.lt.u32.totalorder %s1375_s16, %s1849_s2 }
   0x4   :  { %p1381_p2 = pnand %p1379_p1, %p1376_p0 }
   0x6   :  { %1384 = shalt.err (!%p1381_p2)
}
   0x7   :  { %s1385_s21 = scalar_lea.vmem %s19_s13, 8192  ;;  %p1390_p4 = scmp.lt.s32.totalorder %s19_s13, %s19_s13 }
   0x8   :  { %p1386_p3 = scmp.ne.s32.totalorder %s19_s13, %s1385_s21  ;;  %p1391_p5 = scmp.lt.s32.totalorder %s1385_s21, %s1385_s21 }
   0xa   :  { %p1392_p6 = por %p1391_p5, %p1390_p4 }
   0xc   :  { %p1393_p7 = pnand %p1392_p6, %p1386_p3 }
   0xe   :  { %1396 = shalt.err (!%p1393_p7)
}
   0xf   :  { %s1400_s22 = smov 1024   ;;  %s1401_s23 = smov 64  }
  0x10   :  { %24 = dma.hbm_to_vmem [thread:$0]  %s1849_s2, 8192, %s19_s13, [#allocation3], %s1400_s22, %s1400_s22, %s1401_s23  }
  0x11   :  { %1397 = dma.done.wait [#allocation3], 8192  }
  0x12   :  { %1398 = vsyncadd [#allocation3], 4294959104  ;;  %v1402_v0 = vmov 0.0   ;;  %vm1403_vm0 = vmmov 0   ;;  %vm74_vm1 = vcmask 1043456   ;;  %vm40_vm2 = vcmask 31744  }
  0x13   :  { %1238 = vmatprep.subr.mxu0 %v1402_v0  ;;  %1240 = vmatprep.mubr.msk.f32.mxu0 %vm1403_vm0, %v1402_v0  ;;  %v39_v1 = vld [vmem:[%s1847_s0] sm:$0xf]  ;;  %v29_v3 = vld [vmem:[%s1848_s1 + $0x8] sm:$0xff]  ;;  %v30_v4 = vld [vmem:[%s1848_s1 + $0x10] sm:$0xff]  ;;  %vm303_vm3 = vcmask 1041408   ;;  %vm399_vm4 = vcmask 523264  }
  0x14   :  { %467 = vmatprep.mubr.f32.mxu1 %v1402_v0  ;;  %v28_v2 = vld [vmem:[%s1848_s1] sm:$0xff]  ;;  %1239 = vmatpush3.msk.msra.mxu0 %vm74_vm1, %v39_v1  ;;  %v31_v5 = vld [vmem:[%s1848_s1 + $0x18] sm:$0xff]  ;;  %v33_v7 = vld [vmem:[%s1848_s1 + $0x28] sm:$0xff]  ;;  %vm1172_vm5 = vcmask 1041409   ;;  %vm1174_vm6 = vcmask 1042434   ;;  %vm1176_vm7 = vcmask 1043459  }
  0x15   :  { %1241 = vmatmul.mubr.msk.f32.vlgmr.msra.gmra.mrb[0].mxu0 %vm40_vm2, %v28_v2  ;;  %v32_v6 = vld [vmem:[%s1848_s1 + $0x20] sm:$0xff]  ;;  %v34_v8 = vld [vmem:[%s1848_s1 + $0x30] sm:$0xff]  ;;  %v35_v9 = vld [vmem:[%s1848_s1 + $0x38] sm:$0xff]  ;;  %vm1178_vm8 = vcmask 1044484   ;;  %vm1180_vm9 = vcmask 1045509   ;;  %vm1182_vm10 = vcmask 1046534  }
  0x16   :  { %1243 = vmatprep.mubr.msk.f32.mxu0 %vm1403_vm0, %v1402_v0  ;;  %v36_v10 = vld [vmem:[%s1848_s1 + $0x40] sm:$0xff]  ;;  %v37_v11 = vld [vmem:[%s1848_s1 + $0x48] sm:$0xff]  ;;  %v38_v12 = vld [vmem:[%s1848_s1 + $0x50] sm:$0xff]  ;;  %vm1184_vm11 = vcmask 1047559   ;;  %vm1091_vm12 = vcmask 1048064  }
  0x17   :  { %v336_v38 = vld [vmem:[#allocation2 + $0x8] sm:$0xff]  ;;  %v335_v40 = vld [vmem:[#allocation2] sm:$0xff] }
  0x18   :  { %v344_v39 = vld [vmem:[#allocation2 + $0x48] sm:$0xff]  ;;  %v343_v42 = vld [vmem:[#allocation2 + $0x40] sm:$0xff] }
  0x19   :  { %1244 = vmatmul.mubr.msk.f32.gmra.mrb[2].mxu0 %vm40_vm2, %v29_v3  ;;  %v1273_v41 = vpack.c.bf16 %v344_v39, %v336_v38  ;;  %v340_v43 = vld [vmem:[#allocation2 + $0x28] sm:$0xff]  ;;  %v1275_v45 = vpack.c.bf16 %v343_v42, %v335_v40  ;;  %v339_v47 = vld [vmem:[#allocation2 + $0x20] sm:$0xff]  ;;  %v346_v42 = vld [vmem:[#allocation2 + $0x58] sm:$0xff] }
  0x1a   :  { %1246 = vmatprep.mubr.msk.f32.mxu0 %vm1403_vm0, %v1402_v0  ;;  %v348_v44 = vld [vmem:[#allocation2 + $0x68] sm:$0xff]  ;;  %v347_v48 = vld [vmem:[#allocation2 + $0x60] sm:$0xff] }
  0x1b   :  { %v1305_v46 = vpack.c.bf16 %v348_v44, %v340_v43  ;;  %v352_v49 = vld [vmem:[#allocation2 + $0x88] sm:$0xff]  ;;  %1274 = vmatprep.subr.bf16.mxu1 %v1273_v41  ;;  %v1307_v50 = vpack.c.bf16 %v347_v48, %v339_v47  ;;  %v351_v52 = vld [vmem:[#allocation2 + $0x80] sm:$0xff]  ;;  %v338_v41 = vld [vmem:[#allocation2 + $0x18] sm:$0xff] }
  0x1c   :  { %v360_v51 = vld [vmem:[#allocation2 + $0xc8] sm:$0xff]  ;;  %v359_v53 = vld [vmem:[#allocation2 + $0xc0] sm:$0xff]  ;;  %1276 = vmatpush1.bf16.msra.mxu1 %v1275_v45  ;;  %v1289_v43 = vpack.c.bf16 %v346_v42, %v338_v41  ;;  %v337_v48 = vld [vmem:[#allocation2 + $0x10] sm:$0xff] }
  0x1d   :  { %1247 = vmatmul.mubr.msk.f32.gmra.mrb[4].mxu0 %vm40_vm2, %v30_v4  ;;  %1306 = vmatprep.subr.bf16.mxu0 %v1305_v46  ;;  %v1277_v54 = vpack.c.bf16 %v360_v51, %v352_v49  ;;  %v1279_v55 = vpack.c.bf16 %v359_v53, %v351_v52  ;;  %v356_v56 = vld [vmem:[#allocation2 + $0xa8] sm:$0xff]  ;;  %v355_v58 = vld [vmem:[#allocation2 + $0xa0] sm:$0xff]  ;;  %v345_v49 = vld [vmem:[#allocation2 + $0x50] sm:$0xff] }
  0x1e   :  { %1249 = vmatprep.mubr.msk.f32.mxu0 %vm1403_vm0, %v1402_v0  ;;  %v364_v57 = vld [vmem:[#allocation2 + $0xe8] sm:$0xff]  ;;  %1308 = vmatpush1.bf16.msra.mxu0 %v1307_v50  ;;  %v363_v60 = vld [vmem:[#allocation2 + $0xe0] sm:$0xff]  ;;  %v354_v50 = vld [vmem:[#allocation2 + $0x98] sm:$0xff]  ;;  %v1291_v52 = vpack.c.bf16 %v345_v49, %v337_v48 }
  0x1f   :  { %v1309_v59 = vpack.c.bf16 %v364_v57, %v356_v56  ;;  %v368_v61 = vld [vmem:[#allocation2 + $0x108] sm:$0xff]  ;;  %1278 = vmatprep.subr.bf16.mxu1 %v1277_v54  ;;  %v1311_v63 = vpack.c.bf16 %v363_v60, %v355_v58  ;;  %v367_v2 = vld [vmem:[#allocation2 + $0x100] sm:$0xff]  ;;  %v362_v51 = vld [vmem:[#allocation2 + $0xd8] sm:$0xff] }
  0x20   :  { %v376_v62 = vld [vmem:[#allocation2 + $0x148] sm:$0xff]  ;;  %v375_v3 = vld [vmem:[#allocation2 + $0x140] sm:$0xff]  ;;  %1280 = vmatpush1.bf16.msra.mxu1 %v1279_v55  ;;  %v1293_v54 = vpack.c.bf16 %v362_v51, %v354_v50  ;;  %v353_v55 = vld [vmem:[#allocation2 + $0x90] sm:$0xff] }
  0x21   :  { %1250 = vmatmul.mubr.msk.f32.gmra.mrb[6].mxu0 %vm40_vm2, %v31_v5  ;;  %v1281_v1 = vpack.c.bf16 %v376_v62, %v368_v61  ;;  %v372_v4 = vld [vmem:[#allocation2 + $0x128] sm:$0xff]  ;;  %1310 = vmatprep.subr.bf16.mxu0 %v1309_v59  ;;  %v361_v56 = vld [vmem:[#allocation2 + $0xd0] sm:$0xff]  ;;  %v370_v57 = vld [vmem:[#allocation2 + $0x118] sm:$0xff] }
  0x22   :  { %1252 = vmatprep.mubr.msk.f32.mxu0 %vm1403_vm0, %v1402_v0  ;;  %v380_v5 = vld [vmem:[#allocation2 + $0x168] sm:$0xff]  ;;  %1312 = vmatpush1.bf16.msra.mxu0 %v1311_v63  ;;  %v378_v58 = vld [vmem:[#allocation2 + $0x158] sm:$0xff]  ;;  %v1295_v59 = vpack.c.bf16 %v361_v56, %v353_v55  ;;  %v369_v61 = vld [vmem:[#allocation2 + $0x110] sm:$0xff]  ;;  %v723_v56 = vlaneseq }
  0x23   :  { %1282 = vmatprep.subr.bf16.mxu1 %v1281_v1  ;;  %v1297_v60 = vpack.c.bf16 %v378_v58, %v370_v57  ;;  %v377_v62 = vld [vmem:[#allocation2 + $0x150] sm:$0xff]  ;;  %v386_v63 = vld [vmem:[#allocation2 + $0x198] sm:$0xff] }
  0x24   :  { %v394_v1 = vld [vmem:[#allocation2 + $0x1d8] sm:$0xff]  ;;  %v1572_v57 = vshrl.u32 %v723_v56, 7 }
  0x25   :  { %1253 = vmatmul.mubr.msk.f32.gmra.mrb[8].mxu0 %vm40_vm2, %v32_v6  ;;  %v371_v6 = vld [vmem:[#allocation2 + $0x120] sm:$0xff] }
  0x26   :  { %1255 = vmatprep.mubr.msk.f32.mxu0 %vm1403_vm0, %v1402_v0 }
  0x29   :  { %1256 = vmatmul.mubr.msk.f32.gmra.mrb[10].mxu0 %vm40_vm2, %v33_v7  ;;  %v379_v7 = vld [vmem:[#allocation2 + $0x160] sm:$0xff] }
  0x2a   :  { %1258 = vmatprep.mubr.msk.f32.mxu0 %vm1403_vm0, %v1402_v0 }
  0x2d   :  { %1259 = vmatmul.mubr.msk.f32.gmra.mrb[12].mxu0 %vm40_vm2, %v34_v8  ;;  %v1283_v8 = vpack.c.bf16 %v375_v3, %v367_v2  ;;  %v1299_v2 = vpack.c.bf16 %v377_v62, %v369_v61  ;;  %v1301_v3 = vpack.c.bf16 %v394_v1, %v386_v63 }
  0x2e   :  { %1261 = vmatprep.mubr.msk.f32.mxu0 %vm1403_vm0, %v1402_v0 }
  0x2f   :  { %1284 = vmatpush1.bf16.msra.mxu1 %v1283_v8 }
  0x31   :  { %1262 = vmatmul.mubr.msk.f32.gmra.mrb[14].mxu0 %vm40_vm2, %v35_v9  ;;  %v1313_v9 = vpack.c.bf16 %v380_v5, %v372_v4  ;;  %v385_v4 = vld [vmem:[#allocation2 + $0x190] sm:$0xff] }
  0x32   :  { %1264 = vmatprep.mubr.msk.f32.mxu0 %vm1403_vm0, %v1402_v0  ;;  %v393_v5 = vld [vmem:[#allocation2 + $0x1d0] sm:$0xff] }
  0x33   :  { %1314 = vmatprep.subr.bf16.mxu0 %v1313_v9  ;;  %v1303_v8 = vpack.c.bf16 %v393_v5, %v385_v4 }
  0x35   :  { %1265 = vmatmul.mubr.msk.f32.gmra.mrb[16].mxu0 %vm40_vm2, %v36_v10  ;;  %v384_v10 = vld [vmem:[#allocation2 + $0x188] sm:$0xff] }
  0x36   :  { %1267 = vmatprep.mubr.msk.f32.mxu0 %vm1403_vm0, %v1402_v0 }
  0x39   :  { %1268 = vmatmul.mubr.msk.f32.gmra.mrb[18].mxu0 %vm40_vm2, %v37_v11  ;;  %v392_v11 = vld [vmem:[#allocation2 + $0x1c8] sm:$0xff] }
  0x3a   :  { %1270 = vmatprep.mubr.msk.f32.mxu0 %vm1403_vm0, %v1402_v0 }
  0x3d   :  { %1271 = vmatmul.mubr.msk.f32.gmra.mrb[20].mxu0 %vm40_vm2, %v38_v12  ;;  %v383_v12 = vld [vmem:[#allocation2 + $0x180] sm:$0xff] }
  0x3e   :  { %609 = vmatprep.mubr.f32.mxu0 %v1402_v0 }
  0xe8   :  { %v1512_v13 = vpop.f32.mrb[0].mxu0 }
  0xe9   :  { %v1242_v14 = vpop.f32.mrb[1].mxu0 }
  0xea   :  { %v1315_v14 = vpack.c.bf16 %v379_v7, %v371_v6  ;;  %v342_v6 = vld [vmem:[#allocation2 + $0x38] sm:$0xff] }
  0xeb   :  { %v350_v7 = vld [vmem:[#allocation2 + $0x78] sm:$0xff] }
  0xec   :  { %v1514_v15 = vpop.f32.mrb[2].mxu0  ;;  %1316 = vmatpush1.bf16.msra.mxu0 %v1315_v14  ;;  %v1321_v9 = vpack.c.bf16 %v350_v7, %v342_v6  ;;  %v366_v14 = vld [vmem:[#allocation2 + $0xf8] sm:$0xff] }
  0xed   :  { %v1245_v16 = vpop.f32.mrb[3].mxu0 }
  0xee   :  { %v1285_v16 = vpack.c.bf16 %v392_v11, %v384_v10  ;;  %v341_v10 = vld [vmem:[#allocation2 + $0x30] sm:$0xff] }
  0xef   :  { %v349_v11 = vld [vmem:[#allocation2 + $0x70] sm:$0xff] }
  0xf0   :  { %v1516_v17 = vpop.f32.mrb[4].mxu0  ;;  %1286 = vmatprep.subr.bf16.mxu1 %v1285_v16  ;;  %v1323_v16 = vpack.c.bf16 %v349_v11, %v341_v10 }
  0xf1   :  { %v1248_v18 = vpop.f32.mrb[5].mxu0 }
  0xf2   :  { %v391_v18 = vld [vmem:[#allocation2 + $0x1c0] sm:$0xff] }
  0xf4   :  { %v1518_v19 = vpop.f32.mrb[6].mxu0 }
  0xf5   :  { %v1251_v20 = vpop.f32.mrb[7].mxu0 }
  0xf6   :  { %v388_v20 = vld [vmem:[#allocation2 + $0x1a8] sm:$0xff] }
  0xf8   :  { %v1520_v21 = vpop.f32.mrb[8].mxu0 }
  0xf9   :  { %v1254_v22 = vpop.f32.mrb[9].mxu0 }
  0xfa   :  { %v396_v22 = vld [vmem:[#allocation2 + $0x1e8] sm:$0xff] }
  0xfc   :  { %v1522_v23 = vpop.f32.mrb[10].mxu0 }
  0xfd   :  { %v1257_v24 = vpop.f32.mrb[11].mxu0 }
  0xfe   :  { %v1317_v24 = vpack.c.bf16 %v396_v22, %v388_v20  ;;  %v357_v20 = vld [vmem:[#allocation2 + $0xb0] sm:$0xff] }
  0xff   :  { %v365_v22 = vld [vmem:[#allocation2 + $0xf0] sm:$0xff] }
 0x100   :  { %v1524_v25 = vpop.f32.mrb[12].mxu0  ;;  %1318 = vmatprep.subr.bf16.mxu0 %v1317_v24  ;;  %v374_v24 = vld [vmem:[#allocation2 + $0x138] sm:$0xff] }
 0x101   :  { %v1260_v26 = vpop.f32.mrb[13].mxu0 }
 0x102   :  { %v387_v26 = vld [vmem:[#allocation2 + $0x1a0] sm:$0xff] }
 0x104   :  { %v1526_v27 = vpop.f32.mrb[14].mxu0 }
 0x105   :  { %v1263_v28 = vpop.f32.mrb[15].mxu0 }
 0x106   :  { %v395_v28 = vld [vmem:[#allocation2 + $0x1e0] sm:$0xff] }
 0x108   :  { %v1528_v29 = vpop.f32.mrb[16].mxu0 }
 0x109   :  { %v1266_v30 = vpop.f32.mrb[17].mxu0 }
 0x10a   :  { %v1287_v30 = vpack.c.bf16 %v391_v18, %v383_v12  ;;  %v358_v12 = vld [vmem:[#allocation2 + $0xb8] sm:$0xff] }
 0x10b   :  { %v1325_v18 = vpack.c.bf16 %v366_v14, %v358_v12  ;;  %v1405_v12 = vmov 1966171168  }
 0x10c   :  { %v1530_v31 = vpop.f32.mrb[18].mxu0  ;;  %1288 = vmatpush1.bf16.msra.mxu1 %v1287_v30  ;;  %v866_v14 = vunpack.c.l.s4 %v1405_v12 }
 0x10d   :  { %v1269_v32 = vpop.f32.mrb[19].mxu0  ;;  %1290 = vmatprep.subr.bf16.mxu1 %v1289_v43 }
 0x10e   :  { %v1319_v32 = vpack.c.bf16 %v395_v28, %v387_v26  ;;  %v382_v26 = vld [vmem:[#allocation2 + $0x178] sm:$0xff]  ;;  %v1327_v28 = vpack.c.bf16 %v365_v22, %v357_v20 }
 0x10f   :  { %v1329_v30 = vpack.c.bf16 %v382_v26, %v374_v24 }
 0x110   :  { %v1532_v33 = vpop.f32.mrb[20].mxu0  ;;  %1320 = vmatpush1.bf16.msra.mxu0 %v1319_v32  ;;  %v373_v32 = vld [vmem:[#allocation2 + $0x130] sm:$0xff] }
 0x111   :  { %v1272_v34 = vpop.f32.mrb[21].mxu0  ;;  %v304_v35 = vsel %vm303_vm3, %v1532_v33, 0.0  ;;  %v308_v36 = vmul.f32 %v1532_v33, %v1532_v33 }
 0x112   :  { %305 = vadd.xlane.f32.xlu0 %v304_v35 }
 0x113   :  { %v309_v37 = vsel %vm303_vm3, %v308_v36, 0.0 }
 0x116   :  { %310 = vadd.xlane.f32.xlu0 %v309_v37 }
 0x11a   :  { %321 = vmax.xlane.f32.xlu0 %v1530_v31 }
 0x19f   :  { %v306_v34 = vpop.xlane.xlu0 %305 }
 0x1a0   :  { %v307_v35 = vmul.f32 0.0078125, %v306_v34  ;;  %v381_v34 = vld [vmem:[#allocation2 + $0x170] sm:$0xff] }
 0x1a2   :  { %v313_v37 = vmul.f32 %v307_v35, %v307_v35  ;;  %v315_v44 = vsub.f32 %v1532_v33, %v307_v35  ;;  %v390_v35 = vld [vmem:[#allocation2 + $0x1b8] sm:$0xff] }
 0x1a3   :  { %v311_v36 = vpop.xlane.xlu0 %310 }
 0x1a4   :  { %v312_v38 = vmul.f32 0.0078125, %v311_v36  ;;  %v398_v36 = vld [vmem:[#allocation2 + $0x1f8] sm:$0xff] }
 0x1a6   :  { %v314_v39 = vsub.f32 %v312_v38, %v313_v37  ;;  %v1331_v37 = vpack.c.bf16 %v381_v34, %v373_v32  ;;  %v1333_v38 = vpack.c.bf16 %v398_v36, %v390_v35  ;;  %v889_v34 = vsub.s32 0, %v1572_v57 }
 0x1a7   :  { %v322_v42 = vpop.xlane.xlu0 %321 }
 0x1a8   :  { %v316_v40 = vadd.f32 1e-05, %v314_v39  ;;  %v389_v39 = vld [vmem:[#allocation2 + $0x1b0] sm:$0xff]  ;;  %v324_v43 = vsub.f32 %v1530_v31, %v322_v42 }
 0x1aa   :  { %1345 = vrsqrt.f32 %v316_v40  ;;  %v397_v40 = vld [vmem:[#allocation2 + $0x1f0] sm:$0xff] }
 0x1ab   :  { %v1335_v41 = vpack.c.bf16 %v397_v40, %v389_v39 }
 0x1b4   :  { %v1346_v45 = vpop.eup %1345 }
 0x1b5   :  { %v1541_v46 = vmul.f32 %v1346_v45, %v315_v44 }
 0x1b7   :  { %v330_v47 = vrot.slane %v1541_v46, 6 }
 0x1b9   :  { %331 = vrot.lane.b32.xlu1 %v330_v47, %s1401_s23  ;;  %v327_v47 = vmul.f32 1.442695, %v324_v43 }
 0x1dd   :  { %319 = vmax.xlane.f32.xlu1 %v1528_v29 }
 0x22b   :  { %v332_v53 = vpop.permute.xlu1 %331 }
 0x22c   :  { %v334_v33 = vsel %vm303_vm3, %v1541_v46, %v332_v53 }
 0x22d   :  { %1222 = vmatmul.mubr.msk.f32.vlgmr.msra.gmra.mrb[0].mxu1 %vm399_vm4, %v334_v33  ;;  %1224 = vmatmul.mubr.msk.f32.vlgmr.msra.gmra.mrb[22].mxu0 %vm399_vm4, %v334_v33 }
 0x22e   :  { %1292 = vmatpush1.bf16.msra.mxu1 %v1291_v52  ;;  %538 = vmatprep.mubr.f32.mxu1 %v1402_v0 }
 0x22f   :  { %1294 = vmatprep.subr.bf16.mxu1 %v1293_v54  ;;  %v1404_v54 = vmov 1983009808  }
 0x230   :  { %v721_v55 = vunpack.c.l.s4 %v1404_v54  ;;  %v230_v54 = vmul.f32 %v1526_v27, %v1526_v27 }
 0x232   :  { %1296 = vmatpush1.bf16.msra.mxu1 %v1295_v59 }
 0x233   :  { %1298 = vmatprep.subr.bf16.mxu1 %v1297_v60 }
 0x236   :  { %1300 = vmatpush1.bf16.msra.mxu1 %v1299_v2 }
 0x237   :  { %1302 = vmatprep.subr.bf16.mxu1 %v1301_v3 }
 0x23a   :  { %1304 = vmatpush1.bf16.msra.mxu1 %v1303_v8 }
 0x23b   :  { %1322 = vmatprep.subr.bf16.mxu1 %v1321_v9 }
 0x23d   :  { %1223 = vmatmul.mubr.msk.f32.vlgmr.msra.gmra.mrb[2].mxu1 %vm399_vm4, %v334_v33 }
 0x23e   :  { %1324 = vmatpush1.bf16.msra.mxu1 %v1323_v16  ;;  %680 = vmatprep.mubr.f32.mxu1 %v1402_v0  ;;  %v867_v16 = vunpack.c.0.s8 %v866_v14  ;;  %v229_v14 = vmul.f32 %v1524_v25, %v1524_v25 }
 0x23f   :  { %1326 = vmatprep.subr.bf16.mxu1 %v1325_v18 }
 0x240   :  { %v870_v18 = vsub.s32 %v867_v16, %v1572_v57 }
 0x242   :  { %1328 = vmatpush1.bf16.msra.mxu1 %v1327_v28  ;;  %v871_v22 = vrot.slane %v1541_v46, %v870_v18 }
 0x243   :  { %1330 = vmatprep.subr.bf16.mxu1 %v1329_v30 }
 0x244   :  { %v872_v28 = vcombine.high %v871_v22, %v871_v22  ;;  %v879_v30 = vrot.slane %v871_v22, %v870_v18 }
 0x246   :  { %1332 = vmatpush1.bf16.msra.mxu1 %v1331_v37  ;;  %v886_v40 = vrot.slane %v872_v28, %v870_v18 }
 0x247   :  { %1334 = vmatprep.subr.bf16.mxu1 %v1333_v38  ;;  %v1596_v38 = vrot.slane %v879_v30, %v889_v34  ;;  %v1406_v30 = vmov 1934713408  }
 0x248   :  { %v1601_v42 = vrot.slane %v886_v40, %v889_v34 }
 0x24a   :  { %1336 = vmatpush1.bf16.msra.mxu1 %v1335_v41 }
 0x24d   :  { %1225 = vmatmul.mubr.msk.f32.vlgmr.msra.gmra.mrb[4].mxu1 %vm399_vm4, %v334_v33  ;;  %v722_v33 = vunpack.c.0.s8 %v721_v55 }
 0x24f   :  { %v1575_v58 = vsub.s32 %v722_v33, %v1572_v57 }
 0x26a   :  { %v320_v0 = vpop.xlane.xlu1 %319 }
 0x26b   :  { %v323_v44 = vsub.f32 %v1528_v29, %v320_v0 }
 0x26d   :  { %v325_v45 = vmul.f32 1.442695, %v323_v44 }
 0x26f   :  { %1347 = vpow2.f32 %v325_v45 }
 0x270   :  { %1349 = vpow2.f32 %v327_v47  ;;  %v224_v47 = vmul.f32 %v1514_v15, %v1514_v15 }
 0x279   :  { %v1556_v48 = vpop.eup %1347 }
 0x27a   :  { %1007 = vrot.lane.b32.xlu0 %v1556_v48, %s1401_s23  ;;  %v1560_v49 = vpop.eup %1349  ;;  %v855_v53 = vsel %vm399_vm4, %v1556_v48, 0.0 }
 0x27b   :  { %v858_v29 = vsel %vm399_vm4, %v1560_v49, 0.0 }
 0x27e   :  { %1009 = vrot.lane.b32.xlu0 %v1560_v49, %s1401_s23 }
 0x2ec   :  { %v1008_v50 = vpop.permute.xlu0 %1007 }
 0x2ed   :  { %v1013_v51 = vsel %vm399_vm4, %v1008_v50, 0.0  ;;  %v226_v50 = vmul.f32 %v1518_v19, %v1518_v19 }
 0x2ee   :  { %1014 = vadd.xlane.f32.xlu0 %v1013_v51 }
 0x2f0   :  { %v1010_v31 = vpop.permute.xlu0 %1009 }
 0x2f1   :  { %v1016_v52 = vsel %vm399_vm4, %v1010_v31, 0.0 }
 0x2f2   :  { %859 = vadd.xlane.f32.xlu0 %v858_v29  ;;  %1017 = vadd.xlane.f32.xlu1 %v1016_v52  ;;  %v228_v29 = vmul.f32 %v1522_v23, %v1522_v23 }
 0x2f6   :  { %198 = vadd.xlane.f32.xlu0 %v1512_v13  ;;  %856 = vadd.xlane.f32.xlu1 %v855_v53 }
 0x2fa   :  { %202 = vadd.xlane.f32.xlu0 %v1516_v17 }
 0x300   :  { %v469_v59 = vpop.f32.mrb[0].mxu1  ;;  %v611_v60 = vpop.f32.mrb[22].mxu0 }
 0x301   :  { %v471_v61 = vpop.f32.mrb[1].mxu1  ;;  %v613_v62 = vpop.f32.mrb[23].mxu0 }
 0x302   :  { %v719_v63 = vcombine.low %v469_v59, %v471_v61  ;;  %v787_v1 = vcombine.low %v611_v60, %v613_v62 }
 0x304   :  { %v1578_v2 = vrot.slane %v719_v63, %v1575_v58  ;;  %v1581_v3 = vrot.slane %v787_v1, %v1575_v58 }
 0x310   :  { %v540_v4 = vpop.f32.mrb[2].mxu1 }
 0x311   :  { %v542_v5 = vpop.f32.mrb[3].mxu1 }
 0x312   :  { %v735_v6 = vcombine.low %v540_v4, %v542_v5 }
 0x314   :  { %v1584_v7 = vrot.slane %v735_v6, %v1575_v58  ;;  %v223_v6 = vmul.f32 %v1512_v13, %v1512_v13 }
 0x320   :  { %v682_v8 = vpop.f32.mrb[4].mxu1 }
 0x321   :  { %v684_v9 = vpop.f32.mrb[5].mxu1 }
 0x322   :  { %v803_v10 = vcombine.low %v682_v8, %v684_v9 }
 0x324   :  { %v1587_v11 = vrot.slane %v803_v10, %v1575_v58  ;;  %v227_v10 = vmul.f32 %v1520_v21, %v1520_v21 }
 0x37b   :  { %v1015_v20 = vpop.xlane.xlu0 %1014 }
 0x37c   :  { %1351 = vrcp.f32 %v1015_v20 }
 0x37f   :  { %v1018_v24 = vpop.xlane.xlu1 %1017  ;;  %v860_v26 = vpop.xlane.xlu0 %859 }
 0x380   :  { %1353 = vrcp.f32 %v1018_v24 }
 0x381   :  { %1355 = vrcp.f32 %v860_v26 }
 0x383   :  { %v199_v32 = vpop.xlane.xlu0 %198  ;;  %v857_v31 = vpop.xlane.xlu1 %856 }
 0x384   :  { %v1592_v35 = vmul.f32 0.0078125, %v199_v32  ;;  %1357 = vrcp.f32 %v857_v31  ;;  %v754_v32 = vunpack.c.l.s4 %v1406_v30 }
 0x386   :  { %v1352_v36 = vpop.eup %1351  ;;  %v271_v37 = vsub.f32 %v1512_v13, %v1592_v35 }
 0x387   :  { %v1020_v39 = vmul.f32 %v1352_v36, %v1556_v48 }
 0x389   :  { %v1023_v46 = vmul.f32 %v1020_v39, %v1596_v38  ;;  %v1025_v44 = vmul.f32 %v1020_v39, %v1601_v42 }
 0x38a   :  { %v1354_v41 = vpop.eup %1353 }
 0x38b   :  { %1031 = vrot.lane.b32.xlu1 %v1023_v46, %s1401_s23  ;;  %v1022_v0 = vmul.f32 %v1354_v41, %v1560_v49  ;;  %v1356_v51 = vpop.eup %1355 }
 0x38c   :  { %v864_v52 = vmul.f32 %v1356_v51, %v1560_v49 }
 0x38d   :  { %v1026_v43 = vmul.f32 %v1022_v0, %v1601_v42  ;;  %v1024_v45 = vmul.f32 %v1022_v0, %v1596_v38 }
 0x38e   :  { %v898_v56 = vmul.f32 %v1596_v38, %v864_v52 }
 0x38f   :  { %1037 = vrot.lane.b32.xlu0 %v1026_v43, %s1401_s23  ;;  %1035 = vrot.lane.b32.xlu1 %v1025_v44, %s1401_s23 }
 0x393   :  { %1033 = vrot.lane.b32.xlu1 %v1024_v45, %s1401_s23 }
 0x3ae   :  { %204 = vadd.xlane.f32.xlu0 %v1518_v19 }
 0x3b7   :  { %200 = vadd.xlane.f32.xlu1 %v1514_v15 }
 0x3c4   :  { %704 = vrot.lane.b32.xlu0 %v611_v60, %s1401_s23 }
 0x3c8   :  { %688 = vrot.lane.b32.xlu1 %v469_v59, %s1401_s23  ;;  %692 = vrot.lane.b32.xlu0 %v471_v61, %s1401_s23  ;;  %v904_v59 = vsel %vm399_vm4, %v898_v56, 0.0  ;;  %v900_v61 = vmul.f32 %v1601_v42, %v864_v52 }
 0x3ca   :  { %v910_v63 = vsel %vm399_vm4, %v900_v61, 0.0 }
 0x3cc   :  { %712 = vrot.lane.b32.xlu0 %v682_v8, %s1401_s23  ;;  %708 = vrot.lane.b32.xlu1 %v613_v62, %s1401_s23  ;;  %v1636_v62 = vpop.xlane.xlu0 %202  ;;  %v225_v8 = vmul.f32 %v1516_v17, %v1516_v17 }
 0x3d0   :  { %696 = vrot.lane.b32.xlu1 %v540_v4, %s1401_s23 }
 0x3d4   :  { %700 = vrot.lane.b32.xlu1 %v542_v5, %s1401_s23 }
 0x3d8   :  { %716 = vrot.lane.b32.xlu1 %v684_v9, %s1401_s23  ;;  %v1358_v9 = vpop.eup %1357 }
 0x3d9   :  { %v862_v12 = vmul.f32 %v1358_v9, %v1556_v48 }
 0x3db   :  { %v897_v16 = vmul.f32 %v1596_v38, %v862_v12  ;;  %v899_v20 = vmul.f32 %v1601_v42, %v862_v12  ;;  %v755_v38 = vunpack.c.0.s8 %v754_v32 }
 0x3dd   :  { %v901_v18 = vsel %vm399_vm4, %v897_v16, 0.0  ;;  %v907_v22 = vsel %vm399_vm4, %v899_v20, 0.0  ;;  %v758_v42 = vsub.s32 %v755_v38, %v1572_v57 }
 0x3eb   :  { %233 = vadd.xlane.f32.xlu0 %v224_v47 }
 0x3ef   :  { %208 = vadd.xlane.f32.xlu0 %v1522_v23 }
 0x3f3   :  { %237 = vadd.xlane.f32.xlu0 %v226_v50 }
 0x3f7   :  { %212 = vadd.xlane.f32.xlu0 %v1526_v27 }
 0x3fb   :  { %241 = vadd.xlane.f32.xlu0 %v228_v29 }
 0x3fd   :  { %v1032_v53 = vpop.permute.xlu1 %1031 }
 0x3fe   :  { %v1043_v55 = vsel %vm399_vm4, %v1032_v53, 0.0 }
 0x3ff   :  { %245 = vadd.xlane.f32.xlu0 %v230_v54  ;;  %1044 = vadd.xlane.f32.xlu1 %v1043_v55 }
 0x401   :  { %v1036_v33 = vpop.permute.xlu1 %1035  ;;  %v1038_v4 = vpop.permute.xlu0 %1037 }
 0x402   :  { %v1049_v60 = vsel %vm399_vm4, %v1036_v33, 0.0  ;;  %v1052_v5 = vsel %vm399_vm4, %v1038_v4, 0.0 }
 0x403   :  { %905 = vadd.xlane.f32.xlu0 %v904_v59  ;;  %1050 = vadd.xlane.f32.xlu1 %v1049_v60 }
 0x405   :  { %v1034_v49 = vpop.permute.xlu1 %1033 }
 0x406   :  { %v1046_v1 = vsel %vm399_vm4, %v1034_v49, 0.0 }
 0x407   :  { %911 = vadd.xlane.f32.xlu0 %v910_v63  ;;  %1047 = vadd.xlane.f32.xlu1 %v1046_v1 }
 0x40b   :  { %1053 = vadd.xlane.f32.xlu1 %v1052_v5 }
 0x40f   :  { %231 = vadd.xlane.f32.xlu1 %v223_v6 }
 0x413   :  { %206 = vadd.xlane.f32.xlu1 %v1520_v21 }
 0x417   :  { %235 = vadd.xlane.f32.xlu1 %v225_v8 }
 0x41b   :  { %210 = vadd.xlane.f32.xlu1 %v1524_v25 }
 0x41f   :  { %239 = vadd.xlane.f32.xlu1 %v227_v10 }
 0x423   :  { %243 = vadd.xlane.f32.xlu1 %v229_v14 }
 0x427   :  { %902 = vadd.xlane.f32.xlu1 %v901_v18 }
 0x42b   :  { %908 = vadd.xlane.f32.xlu1 %v907_v22 }
 0x43b   :  { %v205_v24 = vpop.xlane.xlu0 %204 }
 0x43c   :  { %v1656_v26 = vmul.f32 0.0078125, %v205_v24 }
 0x43e   :  { %v274_v48 = vsub.f32 %v1518_v19, %v1656_v26  ;;  %v258_v32 = vmul.f32 %v1656_v26, %v1656_v26 }
 0x43f   :  { %v705_v28 = vpop.permute.xlu0 %704 }
 0x443   :  { %v693_v40 = vpop.permute.xlu0 %692 }
 0x444   :  { %v201_v34 = vpop.xlane.xlu1 %200 }
 0x445   :  { %v1660_v36 = vmul.f32 0.0078125, %v201_v34 }
 0x447   :  { %v272_v39 = vsub.f32 %v1514_v15, %v1660_v36  ;;  %v713_v56 = vpop.permute.xlu0 %712  ;;  %v256_v18 = vmul.f32 %v1660_v36, %v1660_v36 }
 0x448   :  { %v689_v46 = vpop.permute.xlu1 %688 }
 0x449   :  { %v727_v41 = vcombine.low %v689_v46, %v693_v40 }
 0x44b   :  { %v734_v0 = vrot.slane %v727_v41, %v1575_v58 }
 0x44c   :  { %v709_v43 = vpop.permute.xlu1 %708 }
 0x44d   :  { %v751_v44 = vcombine.low %v1578_v2, %v734_v0  ;;  %v752_v45 = vcombine.high %v1578_v2, %v734_v0  ;;  %v795_v47 = vcombine.low %v705_v28, %v709_v43 }
 0x44f   :  { %v802_v50 = vrot.slane %v795_v47, %v1575_v58  ;;  %v1669_v51 = vrot.slane %v752_v45, %v758_v42  ;;  %v1671_v31 = vrot.slane %v751_v44, %v758_v42 }
 0x450   :  { %v697_v15 = vpop.permute.xlu1 %696 }
 0x451   :  { %v819_v29 = vcombine.low %v1581_v3, %v802_v50  ;;  %v820_v52 = vcombine.high %v1581_v3, %v802_v50 }
 0x453   :  { %v1675_v57 = vrot.slane %v819_v29, %v758_v42  ;;  %v1677_v53 = vrot.slane %v820_v52, %v758_v42 }
 0x454   :  { %v701_v54 = vpop.permute.xlu1 %700 }
 0x455   :  { %v743_v55 = vcombine.low %v697_v15, %v701_v54 }
 0x457   :  { %v750_v2 = vrot.slane %v743_v55, %v1575_v58 }
 0x458   :  { %v717_v33 = vpop.permute.xlu1 %716 }
 0x459   :  { %v767_v59 = vcombine.low %v1584_v7, %v750_v2  ;;  %v768_v60 = vcombine.high %v1584_v7, %v750_v2  ;;  %v811_v61 = vcombine.low %v713_v56, %v717_v33 }
 0x45b   :  { %v818_v49 = vrot.slane %v811_v61, %v1575_v58  ;;  %v782_v63 = vrot.slane %v768_v60, %v758_v42  ;;  %v1683_v1 = vrot.slane %v767_v59, %v758_v42 }
 0x45d   :  { %v835_v3 = vcombine.low %v1587_v11, %v818_v49  ;;  %v836_v4 = vcombine.high %v1587_v11, %v818_v49  ;;  %v785_v5 = vcombine.low %v1669_v51, %v782_v63  ;;  %v786_v6 = vcombine.high %v1669_v51, %v782_v63 }
 0x45e   :  { %v783_v8 = vcombine.low %v1671_v31, %v1683_v1  ;;  %v784_v7 = vcombine.high %v1671_v31, %v1683_v1 }
 0x45f   :  { %v843_v9 = vrot.slane %v835_v3, %v758_v42  ;;  %v850_v10 = vrot.slane %v836_v4, %v758_v42 }
 0x461   :  { %v851_v58 = vcombine.low %v1675_v57, %v843_v9  ;;  %v852_v12 = vcombine.high %v1675_v57, %v843_v9  ;;  %v853_v14 = vcombine.low %v1677_v53, %v850_v10  ;;  %v854_v11 = vcombine.high %v1677_v53, %v850_v10 }
 0x478   :  { %v234_v16 = vpop.xlane.xlu0 %233 }
 0x479   :  { %v248_v20 = vmul.f32 0.0078125, %v234_v16 }
 0x47b   :  { %v264_v22 = vsub.f32 %v248_v20, %v256_v18 }
 0x47c   :  { %v209_v24 = vpop.xlane.xlu0 %208 }
 0x47d   :  { %v280_v28 = vadd.f32 1e-05, %v264_v22  ;;  %v220_v46 = vmul.f32 0.0078125, %v209_v24 }
 0x47f   :  { %1359 = vrsqrt.f32 %v280_v28  ;;  %v260_v43 = vmul.f32 %v220_v46, %v220_v46  ;;  %v276_v19 = vsub.f32 %v1522_v23, %v220_v46  ;;  %v255_v23 = vmul.f32 %v1592_v35, %v1592_v35 }
 0x480   :  { %v238_v30 = vpop.xlane.xlu0 %237 }
 0x481   :  { %v250_v34 = vmul.f32 0.0078125, %v238_v30  ;;  %v217_v30 = vmul.f32 0.0078125, %v1636_v62 }
 0x483   :  { %v266_v38 = vsub.f32 %v250_v34, %v258_v32 }
 0x484   :  { %v213_v40 = vpop.xlane.xlu0 %212 }
 0x485   :  { %v282_v41 = vadd.f32 1e-05, %v266_v38  ;;  %v222_v44 = vmul.f32 0.0078125, %v213_v40  ;;  %v257_v38 = vmul.f32 %v217_v30, %v217_v30 }
 0x487   :  { %1361 = vrsqrt.f32 %v282_v41  ;;  %v262_v15 = vmul.f32 %v222_v44, %v222_v44 }
 0x488   :  { %v242_v42 = vpop.xlane.xlu0 %241 }
 0x489   :  { %v1360_v0 = vpop.eup %1359  ;;  %v252_v36 = vmul.f32 0.0078125, %v242_v42 }
 0x48a   :  { %v1701_v45 = vmul.f32 %v1360_v0, %v272_v39 }
 0x48b   :  { %v268_v47 = vsub.f32 %v252_v36, %v260_v43 }
 0x48c   :  { %v246_v50 = vpop.xlane.xlu0 %245  ;;  %v1045_v51 = vpop.xlane.xlu1 %1044 }
 0x48d   :  { %v284_v29 = vadd.f32 1e-05, %v268_v47  ;;  %v254_v52 = vmul.f32 0.0078125, %v246_v50  ;;  %v1055_v57 = vadd.f32 %v1045_v51, %v785_v5 }
 0x48f   :  { %1363 = vrsqrt.f32 %v284_v29  ;;  %v270_v53 = vsub.f32 %v254_v52, %v262_v15  ;;  %1063 = vrot.lane.b32.xlu1 %v1055_v57, %s1401_s23 }
 0x490   :  { %v906_v54 = vpop.xlane.xlu0 %905  ;;  %v1051_v55 = vpop.xlane.xlu1 %1050 }
 0x491   :  { %v1362_v2 = vpop.eup %1361  ;;  %v286_v56 = vadd.f32 1e-05, %v270_v53  ;;  %v914_v33 = vadd.f32 %v906_v54, %v851_v58  ;;  %v1057_v59 = vadd.f32 %v1051_v55, %v786_v6  ;;  %v278_v58 = vsub.f32 %v1526_v27, %v222_v44 }
 0x492   :  { %v1707_v39 = vmul.f32 %v1362_v2, %v274_v48  ;;  %v273_v54 = vsub.f32 %v1516_v17, %v217_v30 }
 0x493   :  { %1365 = vrsqrt.f32 %v286_v56  ;;  %v918_v60 = vmul.f32 %v914_v33, %v1701_v45  ;;  %1067 = vrot.lane.b32.xlu1 %v1057_v59, %s1401_s23 }
 0x494   :  { %v1712_v61 = vmul.f32 %v914_v33, %v1707_v39  ;;  %v912_v49 = vpop.xlane.xlu0 %911  ;;  %v1048_v63 = vpop.xlane.xlu1 %1047 }
 0x495   :  { %v916_v3 = vadd.f32 %v912_v49, %v852_v12  ;;  %v1056_v4 = vadd.f32 %v1048_v63, %v853_v14  ;;  %v934_v49 = vsel %vm399_vm4, %v918_v60, 0.0 }
 0x497   :  { %v1715_v5 = vmul.f32 %v916_v3, %v1701_v45  ;;  %v1718_v6 = vmul.f32 %v916_v3, %v1707_v39  ;;  %1065 = vrot.lane.b32.xlu0 %v1056_v4, %s1401_s23 }
 0x498   :  { %v1054_v26 = vpop.xlane.xlu1 %1053 }
 0x499   :  { %v1364_v48 = vpop.eup %1363  ;;  %v1058_v9 = vadd.f32 %v1054_v26, %v854_v11  ;;  %v943_v60 = vsel %vm399_vm4, %v1715_v5, 0.0  ;;  %v961_v31 = vsel %vm399_vm4, %v1718_v6, 0.0 }
 0x49a   :  { %v1722_v10 = vmul.f32 %v1364_v48, %v276_v19 }
 0x49b   :  { %1069 = vrot.lane.b32.xlu1 %v1058_v9, %s1401_s23 }
 0x49c   :  { %v1727_v12 = vmul.f32 %v914_v33, %v1722_v10  ;;  %v1730_v14 = vmul.f32 %v916_v3, %v1722_v10  ;;  %v232_v16 = vpop.xlane.xlu1 %231 }
 0x49d   :  { %v1366_v18 = vpop.eup %1365  ;;  %v247_v20 = vmul.f32 0.0078125, %v232_v16 }
 0x49e   :  { %v1734_v22 = vmul.f32 %v1366_v18, %v278_v58 }
 0x49f   :  { %v263_v11 = vsub.f32 %v247_v20, %v255_v23 }
 0x4a0   :  { %v1737_v24 = vmul.f32 %v914_v33, %v1734_v22  ;;  %v1740_v27 = vmul.f32 %v916_v3, %v1734_v22  ;;  %v207_v28 = vpop.xlane.xlu1 %206  ;;  %v952_v3 = vsel %vm399_vm4, %v1712_v61, 0.0 }
 0x4a1   :  { %v279_v32 = vadd.f32 1e-05, %v263_v11  ;;  %v219_v42 = vmul.f32 0.0078125, %v207_v28 }
 0x4a3   :  { %1367 = vrsqrt.f32 %v279_v32  ;;  %v259_v36 = vmul.f32 %v219_v42, %v219_v42  ;;  %v275_v9 = vsub.f32 %v1520_v21, %v219_v42 }
 0x4a4   :  { %v236_v34 = vpop.xlane.xlu1 %235 }
 0x4a5   :  { %v249_v40 = vmul.f32 0.0078125, %v236_v34 }
 0x4a7   :  { %v265_v46 = vsub.f32 %v249_v40, %v257_v38  ;;  %v970_v38 = vsel %vm399_vm4, %v1727_v12, 0.0  ;;  %v979_v40 = vsel %vm399_vm4, %v1730_v14, 0.0 }
 0x4a8   :  { %v211_v41 = vpop.xlane.xlu1 %210 }
 0x4a9   :  { %v281_v0 = vadd.f32 1e-05, %v265_v46  ;;  %v221_v47 = vmul.f32 0.0078125, %v211_v41 }
 0x4ab   :  { %1369 = vrsqrt.f32 %v281_v0  ;;  %v261_v29 = vmul.f32 %v221_v47, %v221_v47  ;;  %v277_v28 = vsub.f32 %v1524_v25, %v221_v47 }
 0x4ac   :  { %v240_v43 = vpop.xlane.xlu1 %239 }
 0x4ad   :  { %v1368_v44 = vpop.eup %1367  ;;  %v251_v50 = vmul.f32 0.0078125, %v240_v43 }
 0x4ae   :  { %v1746_v51 = vmul.f32 %v1368_v44, %v271_v37 }
 0x4af   :  { %v267_v62 = vsub.f32 %v251_v50, %v259_v36 }
 0x4b0   :  { %v244_v15 = vpop.xlane.xlu1 %243 }
 0x4b1   :  { %v283_v52 = vadd.f32 1e-05, %v267_v62  ;;  %v253_v57 = vmul.f32 0.0078125, %v244_v15  ;;  %v988_v62 = vsel %vm399_vm4, %v1737_v24, 0.0 }
 0x4b3   :  { %1371 = vrsqrt.f32 %v283_v52  ;;  %v269_v53 = vsub.f32 %v253_v57, %v261_v29  ;;  %v997_v29 = vsel %vm399_vm4, %v1740_v27, 0.0 }
 0x4b4   :  { %v903_v55 = vpop.xlane.xlu1 %902 }
 0x4b5   :  { %v1370_v2 = vpop.eup %1369  ;;  %v285_v56 = vadd.f32 1e-05, %v269_v53  ;;  %v913_v33 = vadd.f32 %v903_v55, %v783_v8 }
 0x4b6   :  { %v1752_v59 = vmul.f32 %v1370_v2, %v273_v54 }
 0x4b7   :  { %1373 = vrsqrt.f32 %v285_v56  ;;  %v917_v13 = vmul.f32 %v913_v33, %v1746_v51 }
 0x4b8   :  { %v921_v35 = vmul.f32 %v913_v33, %v1752_v59  ;;  %v909_v37 = vpop.xlane.xlu1 %908 }
 0x4b9   :  { %v933_v63 = vsel %vm399_vm4, %v917_v13, 0.0  ;;  %v915_v17 = vadd.f32 %v909_v37, %v784_v7 }
 0x4ba   :  { %v935_v8 = vadd.f32 %v934_v49, %v933_v63  ;;  %v951_v4 = vsel %vm399_vm4, %v921_v35, 0.0 }
 0x4bb   :  { %v953_v19 = vadd.f32 %v952_v3, %v951_v4  ;;  %v919_v26 = vmul.f32 %v915_v17, %v1746_v51  ;;  %v923_v48 = vmul.f32 %v915_v17, %v1752_v59 }
 0x4bc   :  { %v936_v58 = vrot.slane %v935_v8, 4 }
 0x4bd   :  { %v1372_v16 = vpop.eup %1371  ;;  %v954_v1 = vrot.slane %v953_v19, 4  ;;  %v942_v7 = vsel %vm399_vm4, %v919_v26, 0.0  ;;  %v960_v61 = vsel %vm399_vm4, %v923_v48, 0.0 }
 0x4be   :  { %v1773_v18 = vmul.f32 %v1372_v16, %v275_v9  ;;  %v937_v23 = vadd.f32 %v936_v58, %v935_v8  ;;  %v944_v20 = vadd.f32 %v943_v60, %v942_v7  ;;  %v962_v11 = vadd.f32 %v961_v31, %v960_v61 }
 0x4bf   :  { %v955_v5 = vadd.f32 %v954_v1, %v953_v19 }
 0x4c0   :  { %v925_v21 = vmul.f32 %v913_v33, %v1773_v18  ;;  %v938_v30 = vrot.slane %v937_v23, 2  ;;  %v927_v32 = vmul.f32 %v915_v17, %v1773_v18  ;;  %v945_v34 = vrot.slane %v944_v20, 4 }
 0x4c1   :  { %v1374_v6 = vpop.eup %1373  ;;  %v956_v46 = vrot.slane %v955_v5, 2  ;;  %v963_v41 = vrot.slane %v962_v11, 4 }
 0x4c2   :  { %v1782_v42 = vmul.f32 %v1374_v6, %v277_v28  ;;  %v939_v0 = vadd.f32 %v938_v30, %v937_v23  ;;  %v969_v25 = vsel %vm399_vm4, %v925_v21, 0.0  ;;  %v946_v43 = vadd.f32 %v945_v34, %v944_v20 }
 0x4c3   :  { %v957_v44 = vadd.f32 %v956_v46, %v955_v5  ;;  %v971_v36 = vadd.f32 %v970_v38, %v969_v25  ;;  %v964_v47 = vadd.f32 %v963_v41, %v962_v11  ;;  %v978_v50 = vsel %vm399_vm4, %v927_v32, 0.0 }
 0x4c4   :  { %v929_v12 = vmul.f32 %v913_v33, %v1782_v42  ;;  %v931_v14 = vmul.f32 %v915_v17, %v1782_v42  ;;  %v947_v15 = vrot.slane %v946_v43, 2  ;;  %v980_v53 = vadd.f32 %v979_v40, %v978_v50 }
 0x4c5   :  { %v972_v52 = vrot.slane %v971_v36, 4  ;;  %v965_v57 = vrot.slane %v964_v47, 2  ;;  %v940_v54 = vrot.slane %v939_v0, 1  ;;  %v958_v13 = vrot.slane %v957_v44, 1 }
 0x4c6   :  { %v987_v55 = vsel %vm399_vm4, %v929_v12, 0.0  ;;  %v948_v2 = vadd.f32 %v947_v15, %v946_v43  ;;  %v996_v56 = vsel %vm399_vm4, %v931_v14, 0.0  ;;  %v981_v49 = vrot.slane %v980_v53, 4 }
 0x4c7   :  { %v973_v35 = vadd.f32 %v972_v52, %v971_v36  ;;  %v989_v24 = vadd.f32 %v988_v62, %v987_v55  ;;  %v966_v37 = vadd.f32 %v965_v57, %v964_v47  ;;  %v998_v63 = vadd.f32 %v997_v29, %v996_v56 }
 0x4c8   :  { %v949_v33 = vrot.slane %v948_v2, 1  ;;  %v941_v8 = vadd.f32 %v940_v54, %v939_v0  ;;  %v982_v19 = vadd.f32 %v981_v49, %v980_v53  ;;  %v959_v48 = vadd.f32 %v958_v13, %v957_v44 }
 0x4c9   :  { %v974_v17 = vrot.slane %v973_v35, 2  ;;  %v990_v3 = vrot.slane %v989_v24, 4  ;;  %v967_v27 = vrot.slane %v966_v37, 1  ;;  %v999_v26 = vrot.slane %v998_v63, 4 }
 0x4ca   :  { %v950_v4 = vadd.f32 %v949_v33, %v948_v2  ;;  %v983_v16 = vrot.slane %v982_v19, 2 }
 0x4cb   :  { %v975_v60 = vadd.f32 %v974_v17, %v973_v35  ;;  %v991_v9 = vadd.f32 %v990_v3, %v989_v24  ;;  %v968_v58 = vadd.f32 %v967_v27, %v966_v37  ;;  %v1000_v31 = vadd.f32 %v999_v26, %v998_v63 }
 0x4cc   :  { %v1173_v1 = vsel %vm1172_vm5, %v950_v4, %v941_v8  ;;  %v984_v20 = vadd.f32 %v983_v16, %v982_v19 }
 0x4cd   :  { %v976_v7 = vrot.slane %v975_v60, 1  ;;  %v992_v61 = vrot.slane %v991_v9, 2  ;;  %v1175_v23 = vsel %vm1174_vm6, %v959_v48, %v1173_v1  ;;  %v1001_v11 = vrot.slane %v1000_v31, 2 }
 0x4ce   :  { %v1177_v28 = vsel %vm1176_vm7, %v968_v58, %v1175_v23  ;;  %v985_v30 = vrot.slane %v984_v20, 1 }
 0x4cf   :  { %v977_v5 = vadd.f32 %v976_v7, %v975_v60  ;;  %v993_v21 = vadd.f32 %v992_v61, %v991_v9  ;;  %v1002_v32 = vadd.f32 %v1001_v11, %v1000_v31 }
 0x4d0   :  { %v986_v38 = vadd.f32 %v985_v30, %v984_v20 }
 0x4d1   :  { %v994_v34 = vrot.slane %v993_v21, 1  ;;  %v1179_v6 = vsel %vm1178_vm8, %v977_v5, %v1177_v28  ;;  %v1003_v40 = vrot.slane %v1002_v32, 1 }
 0x4d2   :  { %v1181_v0 = vsel %vm1180_vm9, %v986_v38, %v1179_v6 }
 0x4d3   :  { %v995_v46 = vadd.f32 %v994_v34, %v993_v21  ;;  %v1004_v41 = vadd.f32 %v1003_v40, %v1002_v32 }
 0x4d5   :  { %v1183_v25 = vsel %vm1182_vm10, %v995_v46, %v1181_v0 }
 0x4d6   :  { %v1801_v43 = vsel %vm1184_vm11, %v1004_v41, %v1183_v25 }
 0x501   :  { %v1064_v44 = vpop.permute.xlu1 %1063 }
 0x502   :  { %v1075_v36 = vmul.f32 %v1064_v44, %v1746_v51  ;;  %v1079_v47 = vmul.f32 %v1064_v44, %v1752_v59  ;;  %v1083_v50 = vmul.f32 %v1064_v44, %v1773_v18  ;;  %v1087_v62 = vmul.f32 %v1064_v44, %v1782_v42 }
 0x504   :  { %v1092_v52 = vsel %vm1091_vm12, %v1075_v36, 0.0  ;;  %v1110_v57 = vsel %vm1091_vm12, %v1079_v47, 0.0  ;;  %v1128_v53 = vsel %vm1091_vm12, %v1083_v50, 0.0  ;;  %v1146_v54 = vsel %vm1091_vm12, %v1087_v62, 0.0 }
 0x505   :  { %v1068_v12 = vpop.permute.xlu1 %1067 }
 0x506   :  { %v1077_v14 = vmul.f32 %v1068_v12, %v1746_v51  ;;  %v1081_v15 = vmul.f32 %v1068_v12, %v1752_v59  ;;  %v1085_v29 = vmul.f32 %v1068_v12, %v1773_v18  ;;  %v1089_v59 = vmul.f32 %v1068_v12, %v1782_v42 }
 0x508   :  { %v1101_v18 = vsel %vm1091_vm12, %v1077_v14, 0.0  ;;  %v1119_v35 = vsel %vm1091_vm12, %v1081_v15, 0.0  ;;  %v1137_v24 = vsel %vm1091_vm12, %v1085_v29, 0.0 }
 0x509   :  { %v1066_v55 = vpop.permute.xlu0 %1065 }
 0x50a   :  { %v1076_v2 = vmul.f32 %v1066_v55, %v1701_v45  ;;  %v1080_v56 = vmul.f32 %v1066_v55, %v1707_v39  ;;  %v1084_v13 = vmul.f32 %v1066_v55, %v1722_v10  ;;  %v1088_v51 = vmul.f32 %v1066_v55, %v1734_v22 }
 0x50c   :  { %v1093_v37 = vsel %vm1091_vm12, %v1076_v2, 0.0  ;;  %v1111_v33 = vsel %vm1091_vm12, %v1080_v56, 0.0  ;;  %v1129_v49 = vsel %vm1091_vm12, %v1084_v13, 0.0  ;;  %v1147_v63 = vsel %vm1091_vm12, %v1088_v51, 0.0 }
 0x50d   :  { %v1094_v17 = vadd.f32 %v1093_v37, %v1092_v52  ;;  %v1112_v3 = vadd.f32 %v1111_v33, %v1110_v57  ;;  %v1130_v27 = vadd.f32 %v1129_v49, %v1128_v53  ;;  %v1148_v8 = vadd.f32 %v1147_v63, %v1146_v54  ;;  %v1070_v4 = vpop.permute.xlu1 %1069 }
 0x50e   :  { %v1078_v42 = vmul.f32 %v1070_v4, %v1701_v45  ;;  %v1082_v19 = vmul.f32 %v1070_v4, %v1707_v39  ;;  %v1086_v26 = vmul.f32 %v1070_v4, %v1722_v10  ;;  %v1090_v48 = vmul.f32 %v1070_v4, %v1734_v22 }
 0x50f   :  { %v1095_v60 = vrot.slane %v1094_v17, 4  ;;  %v1113_v9 = vrot.slane %v1112_v3, 4  ;;  %v1131_v58 = vrot.slane %v1130_v27, 4  ;;  %v1149_v16 = vrot.slane %v1148_v8, 4 }
 0x510   :  { %v1102_v31 = vsel %vm1091_vm12, %v1078_v42, 0.0  ;;  %v1120_v1 = vsel %vm1091_vm12, %v1082_v19, 0.0  ;;  %v1138_v7 = vsel %vm1091_vm12, %v1086_v26, 0.0  ;;  %v1156_v61 = vsel %vm1091_vm12, %v1090_v48, 0.0 }
 0x511   :  { %v1096_v23 = vadd.f32 %v1095_v60, %v1094_v17  ;;  %v1114_v45 = vadd.f32 %v1113_v9, %v1112_v3  ;;  %v1132_v20 = vadd.f32 %v1131_v58, %v1130_v27  ;;  %v1155_v39 = vsel %vm1091_vm12, %v1089_v59, 0.0 }
 0x512   :  { %v1103_v10 = vadd.f32 %v1102_v31, %v1101_v18  ;;  %v1121_v11 = vadd.f32 %v1120_v1, %v1119_v35  ;;  %v1139_v22 = vadd.f32 %v1138_v7, %v1137_v24  ;;  %v1157_v28 = vadd.f32 %v1156_v61, %v1155_v39 }
 0x513   :  { %v1097_v5 = vrot.slane %v1096_v23, 2  ;;  %v1115_v21 = vrot.slane %v1114_v45, 2  ;;  %v1150_v30 = vadd.f32 %v1149_v16, %v1148_v8  ;;  %v1133_v46 = vrot.slane %v1132_v20, 2 }
 0x514   :  { %v1104_v32 = vrot.slane %v1103_v10, 4  ;;  %v1122_v34 = vrot.slane %v1121_v11, 4  ;;  %v1140_v6 = vrot.slane %v1139_v22, 4  ;;  %v1158_v38 = vrot.slane %v1157_v28, 4 }
 0x515   :  { %v1098_v40 = vadd.f32 %v1097_v5, %v1096_v23  ;;  %v1116_v36 = vadd.f32 %v1115_v21, %v1114_v45  ;;  %v1151_v47 = vrot.slane %v1150_v30, 2  ;;  %v1134_v15 = vadd.f32 %v1133_v46, %v1132_v20 }
 0x516   :  { %v1105_v41 = vadd.f32 %v1104_v32, %v1103_v10  ;;  %v1123_v0 = vadd.f32 %v1122_v34, %v1121_v11  ;;  %v1141_v25 = vadd.f32 %v1140_v6, %v1139_v22  ;;  %v1159_v44 = vadd.f32 %v1158_v38, %v1157_v28 }
 0x517   :  { %v1099_v29 = vrot.slane %v1098_v40, 1  ;;  %v1117_v54 = vrot.slane %v1116_v36, 1  ;;  %v1152_v55 = vadd.f32 %v1151_v47, %v1150_v30  ;;  %v1135_v51 = vrot.slane %v1134_v15, 1 }
 0x518   :  { %v1106_v50 = vrot.slane %v1105_v41, 2  ;;  %v1124_v62 = vrot.slane %v1123_v0, 2  ;;  %v1142_v12 = vrot.slane %v1141_v25, 2  ;;  %v1160_v14 = vrot.slane %v1159_v44, 2 }
 0x519   :  { %v1100_v59 = vadd.f32 %v1099_v29, %v1098_v40  ;;  %v1118_v24 = vadd.f32 %v1117_v54, %v1116_v36  ;;  %v1153_v37 = vrot.slane %v1152_v55, 1  ;;  %v1136_v17 = vadd.f32 %v1135_v51, %v1134_v15 }
 0x51a   :  { %v1107_v52 = vadd.f32 %v1106_v50, %v1105_v41  ;;  %v1125_v57 = vadd.f32 %v1124_v62, %v1123_v0  ;;  %v1143_v53 = vadd.f32 %v1142_v12, %v1141_v25  ;;  %v1161_v13 = vadd.f32 %v1160_v14, %v1159_v44 }
 0x51b   :  { %v1154_v4 = vadd.f32 %v1153_v37, %v1152_v55 }
 0x51c   :  { %v1108_v2 = vrot.slane %v1107_v52, 1  ;;  %v1126_v56 = vrot.slane %v1125_v57, 1  ;;  %v1144_v35 = vrot.slane %v1143_v53, 1  ;;  %v1162_v49 = vrot.slane %v1161_v13, 1 }
 0x51e   :  { %v1109_v18 = vadd.f32 %v1108_v2, %v1107_v52  ;;  %v1127_v33 = vadd.f32 %v1126_v56, %v1125_v57  ;;  %v1145_v27 = vadd.f32 %v1144_v35, %v1143_v53  ;;  %v1163_v19 = vadd.f32 %v1162_v49, %v1161_v13 }
 0x520   :  { %v1195_v63 = vsel %vm1172_vm5, %v1109_v18, %v1100_v59 }
 0x521   :  { %v1196_v3 = vsel %vm1174_vm6, %v1118_v24, %v1195_v63 }
 0x522   :  { %v1197_v8 = vsel %vm1176_vm7, %v1127_v33, %v1196_v3 }
 0x523   :  { %v1198_v42 = vsel %vm1178_vm8, %v1136_v17, %v1197_v8 }
 0x524   :  { %v1199_v26 = vsel %vm1180_vm9, %v1145_v27, %v1198_v42 }
 0x525   :  { %v1200_v48 = vsel %vm1182_vm10, %v1154_v4, %v1199_v26 }
 0x526   :  { %v1201_v60 = vsel %vm1184_vm11, %v1163_v19, %v1200_v48 }
 0x527   :  { %v1203_v9 = vsel %vm399_vm4, %v1801_v43, %v1201_v60 }
 0x528   :  { %1204 = vst [vmem:[%s1850_s3] sm:$0xff] %v1203_v9 }
 0x529   :  { %1209 = vsyncpa [#allocation3], 1 }

</bundles_post_ra>
